<compile_context>
chip_gen: v7x
topology: tpu7x:2x2x1
jax: 0.10.0
libtpu: 0.0.40
codegen_flags: <defaults>
</compile_context>

<pallas_src>
import functools

import jax
import jax.numpy as jnp
from jax import lax
from jax.experimental import pallas as pl
from jax.experimental.pallas import tpu as pltpu


# ------------------------------ Pallas kernel ------------------------------ #

def bilstm_recurrence_kernel(xg_ref,     # (CT, Bp, 8H) streamed gate pre-activations
                             whh_ref,    # (2H, 8H)  block-diagonal fused recurrent weight (f32)
                             fcw_ref,    # (2H, O)   final linear weight (f32)
                             fcb_ref,    # (1, O)    final linear bias (f32)
                             out_ref,    # (Bp, O)   probabilities (written at last chunk)
                             h_scr,      # (Bp, 2H)  f32 persistent hidden state [h_f | h_b]
                             c_scr,      # (Bp, 2H)  f32 persistent cell state   [c_f | c_b]
                             *, chunk_len, hidden_dim, unroll):
    H = hidden_dim
    H2 = 2 * H
    chunk = pl.program_id(0)

    # ---- init carried state at the first chunk ----
    @pl.when(chunk == 0)
    def _():
        h_scr[...] = jnp.zeros_like(h_scr)
        c_scr[...] = jnp.zeros_like(c_scr)

    w_hh = whh_ref[...]                     # hoisted out of the serial loop

    def step(i, carry):
        h, c = carry                        # (Bp, 2H) f32 each
        # Single contiguous load: forward columns already hold time t, backward columns
        # already hold time T-1-t (pre-reversed in the wrapper) -> no select / no mask.
        gx = xg_ref[i].astype(jnp.float32)  # (Bp, 8H)
        # one fused MXU push for both directions (block-diagonal W_hh)
        gates = gx + jnp.dot(h, w_hh, preferred_element_type=jnp.float32)
        # column layout: [i_f i_b | f_f f_b | o_f o_b | g_f g_b]
        sig = jax.nn.sigmoid(gates[:, :3 * H2])   # i, f, o in ONE contiguous pass
        g   = jnp.tanh(gates[:, 3 * H2:])         # g gate
        i_g = sig[:, 0 * H2:1 * H2]
        f_g = sig[:, 1 * H2:2 * H2]
        o_g = sig[:, 2 * H2:3 * H2]
        c = f_g * c + i_g * g                     # f32 cell state
        h = o_g * jnp.tanh(c)                     # f32 hidden state (no bf16 repack)
        return h, c

    h, c = lax.fori_loop(0, chunk_len, step, (h_scr[...], c_scr[...]), unroll=unroll)
    h_scr[...] = h
    c_scr[...] = c

    # ---- finalize: fc([h_f | h_b]) + sigmoid at the last chunk ----
    @pl.when(chunk == pl.num_programs(0) - 1)
    def _():
        logits = (jnp.dot(h, fcw_ref[...], preferred_element_type=jnp.float32)
                  + fcb_ref[...])
        out_ref[...] = jax.nn.sigmoid(logits)


# --------------------------- parameter packing ----------------------------- #

def _pack_dir_interleaved(w_f, w_b, hidden_dim):
    """(R, 4H) torch gate order (i,f,g,o) per direction ->
    (R, 8H) with kernel layout [i_f i_b | f_f f_b | o_f o_b | g_f g_b]."""
    H = hidden_dim
    R = w_f.shape[0]
    wf = w_f.reshape(R, 4, H)
    wb = w_b.reshape(R, 4, H)
    cols = []
    for gate in (0, 1, 3, 2):                 # i, f, o, g
        cols.append(wf[:, gate])
        cols.append(wb[:, gate])
    return jnp.concatenate(cols, axis=1)      # (R, 8H)


# ------------------------------ JAX wrapper -------------------------------- #

def bilstm_forward(x_tokens, params, *, compute_dtype=jnp.float32,
                   max_chunk_bytes=8 << 20):
    """x_tokens: (B, T) int32 token ids -> (B, output_dim) float32 probabilities."""
    H = params["hidden_dim"]
    O = params["fc_b"].shape[-1]

    # ---- XLA glue: embedding gather (data-dependent gather) ----
    emb = params["embedding"][x_tokens].astype(jnp.float32)       # (B, T, E)
    B, T, E = emb.shape

    # pad batch to a sublane multiple so (Bp, *) tiles are 8-aligned
    Bp = ((B + 7) // 8) * 8
    x_tme = jnp.transpose(emb, (1, 0, 2))                         # (T, B, E)
    if Bp != B:
        x_tme = jnp.pad(x_tme, ((0, 0), (0, Bp - B), (0, 0)))

    # ---- weight packing ----
    w_ih = _pack_dir_interleaved(params["w_ih_f"], params["w_ih_b"], H)    # (E, 8H)
    b_ih = _pack_dir_interleaved(params["b_f"], params["b_b"], H)          # (1, 8H)
    zeros_hh = jnp.zeros_like(params["w_hh_f"])
    w_hh = jnp.concatenate(
        [_pack_dir_interleaved(params["w_hh_f"], zeros_hh, H),   # rows 0:H  -> fwd cols
         _pack_dir_interleaved(zeros_hh, params["w_hh_b"], H)],  # rows H:2H -> bwd cols
        axis=0).astype(jnp.float32)                                        # (2H, 8H)
    fc_w = params["fc_w"].astype(jnp.float32)                              # (2H, O)
    fc_b = params["fc_b"].astype(jnp.float32)                              # (1, O)

    # ---- XLA glue: hoisted input-projection GEMM for BOTH directions ----
    # compute_dtype only affects this GEMM's operands and the streamed xg storage;
    # the recurrence itself stays f32.
    prec = (jax.lax.Precision.HIGHEST if jnp.dtype(compute_dtype) == jnp.float32
            else jax.lax.Precision.DEFAULT)
    x2d = x_tme.reshape(T * Bp, E).astype(compute_dtype)
    xg = (jnp.dot(x2d, w_ih.astype(compute_dtype), precision=prec,
                  preferred_element_type=jnp.float32)
          .reshape(T, Bp, 8 * H) + b_ih)                                   # (T, Bp, 8H) f32

    # Time-reverse the backward-direction columns so the kernel's step t reads ONE
    # contiguous row holding [fwd gates of x_t | bwd gates of x_{T-1-t}].
    xg4 = xg.reshape(T, Bp, 4, 2, H)                                       # [..., gate, dir, H]
    xg = jnp.concatenate([xg4[:, :, :, 0:1, :], xg4[::-1, :, :, 1:2, :]], axis=3)
    xg = xg.reshape(T, Bp, 8 * H).astype(compute_dtype)                    # streamed storage dtype

    # ---- time chunking for the streamed pipeline (VMEM no longer scales with T) ----
    itemsize = jnp.dtype(compute_dtype).itemsize
    bytes_per_step = Bp * 8 * H * itemsize
    max_ct = max(1, int(max_chunk_bytes // (2 * bytes_per_step)))   # 2x: double-buffered
    CT = 1
    for d in range(1, T + 1):                                       # largest divisor of T <= max_ct
        if T % d == 0 and d <= max_ct:
            CT = d
    num_chunks = T // CT

    # unroll from the per-step vreg footprint (gates tile), not just T
    gate_vregs = ((Bp + 7) // 8) * ((8 * H + 127) // 128)
    if gate_vregs <= 4:
        unroll = 8
    elif gate_vregs <= 8:
        unroll = 4
    elif gate_vregs <= 16:
        unroll = 2
    else:
        unroll = 1
    unroll = max(1, min(unroll, CT))

    # ---- VMEM budget: actual double-buffered need + headroom, per-generation cap ----
    need = (2 * CT * bytes_per_step                                 # streamed xg chunk x2
            + 2 * int(w_hh.size + fc_w.size + fc_b.size) * 4        # resident weights
            + Bp * O * 4                                            # output block
            + 2 * Bp * 2 * H * 4)                                   # h/c scratch
    try:
        cap = int(pltpu.get_tpu_info().vmem_capacity_bytes * 0.85)
    except Exception:
        cap = 48 << 20          # safe on every generation (v7x has 64 MiB physical)
    vmem_limit = int(min(cap, max(need + (4 << 20), 16 << 20)))

    kernel = functools.partial(bilstm_recurrence_kernel,
                               chunk_len=CT, hidden_dim=H, unroll=unroll)

    out = pl.pallas_call(
        kernel,
        out_shape=jax.ShapeDtypeStruct((Bp, O), jnp.float32),
        grid=(num_chunks,),
        in_specs=[
            pl.BlockSpec((CT, Bp, 8 * H), lambda c: (c, 0, 0)),   # streamed xg chunks
            pl.BlockSpec((2 * H, 8 * H), lambda c: (0, 0)),       # constant-index weights
            pl.BlockSpec((2 * H, O), lambda c: (0, 0)),
            pl.BlockSpec((1, O), lambda c: (0, 0)),
        ],
        out_specs=pl.BlockSpec((Bp, O), lambda c: (0, 0)),
        scratch_shapes=[pltpu.VMEM((Bp, 2 * H), jnp.float32),     # h_cat (persists over grid)
                        pltpu.VMEM((Bp, 2 * H), jnp.float32)],    # c_cat
        compiler_params=pltpu.CompilerParams(
            dimension_semantics=("arbitrary",),                    # serial recurrence
            vmem_limit_bytes=vmem_limit),
    )(xg, w_hh, fc_w, fc_b)
    return out[:B]


# --------------------------- pure-JAX reference ---------------------------- #

def reference_forward(x_tokens, params):
    emb = params["embedding"][x_tokens].astype(jnp.float32)      # (B, T, E)
    H = params["hidden_dim"]
    xs = jnp.transpose(emb, (1, 0, 2))                           # (T, B, E)
    B = xs.shape[1]
    prec = jax.lax.Precision.HIGHEST

    def run_dir(seq, w_ih, w_hh, b):
        def step(carry, xt):
            h, c = carry
            gates = (jnp.dot(xt, w_ih, precision=prec)
                     + jnp.dot(h, w_hh, precision=prec) + b)
            i = jax.nn.sigmoid(gates[:, :H])
            f = jax.nn.sigmoid(gates[:, H:2 * H])
            g = jnp.tanh(gates[:, 2 * H:3 * H])
            o = jax.nn.sigmoid(gates[:, 3 * H:])
            c = f * c + i * g
            h = o * jnp.tanh(c)
            return (h, c), None
        h0 = jnp.zeros((B, H), jnp.float32)
        (h, _c), _ = lax.scan(step, (h0, h0), seq)
        return h

    hf = run_dir(xs, params["w_ih_f"], params["w_hh_f"], params["b_f"])
    hb = run_dir(xs[::-1], params["w_ih_b"], params["w_hh_b"], params["b_b"])
    hcat = jnp.concatenate([hf, hb], axis=1)
    return jax.nn.sigmoid(jnp.dot(hcat, params["fc_w"], precision=prec) + params["fc_b"])


# ------------------------------ param setup -------------------------------- #

def init_params(key, vocab_size, embedding_dim, hidden_dim, output_dim):
    ks = jax.random.split(key, 10)
    bound = 1.0 / jnp.sqrt(hidden_dim)

    def uni(k, shape):
        return jax.random.uniform(k, shape, jnp.float32, -bound, bound)

    return {
        "hidden_dim": hidden_dim,
        "embedding": jax.random.normal(ks[0], (vocab_size, embedding_dim), jnp.float32),
        # forward direction (stored already transposed: x @ W), torch gate order i,f,g,o
        "w_ih_f": uni(ks[1], (embedding_dim, 4 * hidden_dim)),
        "w_hh_f": uni(ks[2], (hidden_dim, 4 * hidden_dim)),
        "b_f":    uni(ks[3], (1, 4 * hidden_dim)),   # = b_ih + b_hh combined
        # backward direction
        "w_ih_b": uni(ks[4], (embedding_dim, 4 * hidden_dim)),
        "w_hh_b": uni(ks[5], (hidden_dim, 4 * hidden_dim)),
        "b_b":    uni(ks[6], (1, 4 * hidden_dim)),
        # final linear (2H -> O)
        "fc_w":   uni(ks[7], (2 * hidden_dim, output_dim)),
        "fc_b":   uni(ks[8], (1, output_dim)),
    }


# ---------------------------------- main ----------------------------------- #

if __name__ == "__main__":
    vocab_size, embedding_dim, hidden_dim, output_dim = 50, 16, 32, 1
    batch, seq_len = 2, 8

    key = jax.random.PRNGKey(0)
    k_param, k_tok = jax.random.split(key)
    params = init_params(k_param, vocab_size, embedding_dim, hidden_dim, output_dim)
    x_tokens = jax.random.randint(k_tok, (batch, seq_len), 0, vocab_size, dtype=jnp.int32)

    ref = jax.block_until_ready(reference_forward(x_tokens, params))

    # f32 path (tight check)
    out = jax.block_until_ready(bilstm_forward(x_tokens, params,
                                               compute_dtype=jnp.float32))
    assert out.shape == (batch, output_dim)
    assert jnp.allclose(out, ref, atol=1e-4, rtol=1e-4), (out, ref)

    # bf16 projection / xg-storage path (loose check) — recurrence math stays f32
    out_bf16 = jax.block_until_ready(bilstm_forward(x_tokens, params,
                                                    compute_dtype=jnp.bfloat16))
    assert out_bf16.shape == (batch, output_dim)
    assert jnp.allclose(out_bf16, ref, atol=1e-1), (out_bf16, ref)

    print("KERNEL_OK")
</pallas_src>

<mosaic_0001>
module attributes {stable_mosaic.version = 11 : i64} {
  func.func @bilstm_recurrence_kernel(%arg0: i32, %arg1: memref<8x8x256xf32, #tpu.memory_space<vmem>>, %arg2: memref<64x256xf32, #tpu.memory_space<vmem>>, %arg3: memref<64x1xf32, #tpu.memory_space<vmem>>, %arg4: memref<1x1xf32, #tpu.memory_space<vmem>>, %arg5: memref<8x1xf32, #tpu.memory_space<vmem>>, %arg6: memref<8x64xf32, #tpu.memory_space<vmem>>, %arg7: memref<8x64xf32, #tpu.memory_space<vmem>>) attributes {dimension_semantics = [#tpu.dimension_semantics<arbitrary>], iteration_bounds = array<i64: 1>, scalar_prefetch = 0 : i64, scratch_operands = 2 : i64, tpu.core_type = #tpu.core_type<tc>, window_params = [{transform_indices = @transform_0, window_bounds = array<i64: 8, 8, 256>}, {pipeline_mode = #tpu.pipeline_mode<synchronous>, transform_indices = @transform_1, window_bounds = array<i64: 64, 256>}, {pipeline_mode = #tpu.pipeline_mode<synchronous>, transform_indices = @transform_2, window_bounds = array<i64: 64, 1>}, {pipeline_mode = #tpu.pipeline_mode<synchronous>, transform_indices = @transform_3, window_bounds = array<i64: 1, 1>}, {pipeline_mode = #tpu.pipeline_mode<synchronous>, transform_indices = @transform_4, window_bounds = array<i64: 8, 1>}]} {
    %c0_i32 = arith.constant 0 : i32
    %0 = arith.cmpi eq, %arg0, %c0_i32 : i32
    %1 = arith.extui %0 : i1 to i32
    %c0_i32_0 = arith.constant 0 : i32
    %2 = arith.cmpi ne, %1, %c0_i32_0 : i32
    scf.if %2 {
      %cst_44 = arith.constant 0.000000e+00 : f32
      %179 = vector.broadcast %cst_44 : f32 to vector<8x64xf32>
      %c0_45 = arith.constant 0 : index
      %c0_46 = arith.constant 0 : index
      %180 = vector.load %arg6[%c0_45, %c0_46] : memref<8x64xf32, #tpu.memory_space<vmem>>, vector<8x64xf32>
      tpu.vector_store %arg6[%c0_45, %c0_46], %179 {strides = array<i32>} : memref<8x64xf32, #tpu.memory_space<vmem>>, vector<8x64xf32>,
      %cst_47 = arith.constant 0.000000e+00 : f32
      %181 = vector.broadcast %cst_47 : f32 to vector<8x64xf32>
      %c0_48 = arith.constant 0 : index
      %c0_49 = arith.constant 0 : index
      %182 = vector.load %arg7[%c0_48, %c0_49] : memref<8x64xf32, #tpu.memory_space<vmem>>, vector<8x64xf32>
      tpu.vector_store %arg7[%c0_48, %c0_49], %181 {strides = array<i32>} : memref<8x64xf32, #tpu.memory_space<vmem>>, vector<8x64xf32>,
    } else {
    }
    %c0 = arith.constant 0 : index
    %c0_1 = arith.constant 0 : index
    %3 = vector.load %arg2[%c0, %c0_1] : memref<64x256xf32, #tpu.memory_space<vmem>>, vector<64x256xf32>
    %c0_2 = arith.constant 0 : index
    %c0_3 = arith.constant 0 : index
    %4 = vector.load %arg6[%c0_2, %c0_3] : memref<8x64xf32, #tpu.memory_space<vmem>>, vector<8x64xf32>
    %c0_4 = arith.constant 0 : index
    %c0_5 = arith.constant 0 : index
    %5 = vector.load %arg7[%c0_4, %c0_5] : memref<8x64xf32, #tpu.memory_space<vmem>>, vector<8x64xf32>
    %c0_i32_6 = arith.constant 0 : i32
    %6 = arith.index_cast %c0_i32_6 : i32 to index
    %c0_7 = arith.constant 0 : index
    %c0_8 = arith.constant 0 : index
    %7 = vector.load %arg1[%6, %c0_7, %c0_8] : memref<8x8x256xf32, #tpu.memory_space<vmem>>, vector<1x8x256xf32>
    %8 = vector.shape_cast %7 : vector<1x8x256xf32> to vector<8x256xf32>
    %cst = arith.constant dense<0.000000e+00> : vector<8x256xf32>
    %9 = tpu.matmul %4, %3, %cst {dimension_numbers = #tpu.dot_dimension_numbers<[1], [0], [0], [1], [0, 0, 1, 1], [], []>} : vector<8x64xf32>, vector<64x256xf32>, vector<8x256xf32> -> vector<8x256xf32>
    %10 = arith.addf %8, %9 : vector<8x256xf32>
    %11 = vector.extract_strided_slice %10 {offsets = [0, 0], sizes = [8, 192], strides = [1, 1]} : vector<8x256xf32> to vector<8x192xf32>
    %12 = arith.negf %11 : vector<8x192xf32>
    %13 = math.exp %12 : vector<8x192xf32>
    %cst_9 = arith.constant 1.000000e+00 : f32
    %14 = vector.broadcast %cst_9 : f32 to vector<8x192xf32>
    %15 = arith.addf %14, %13 : vector<8x192xf32>
    %16 = arith.divf %14, %15 : vector<8x192xf32>
    %17 = vector.extract_strided_slice %10 {offsets = [0, 192], sizes = [8, 64], strides = [1, 1]} : vector<8x256xf32> to vector<8x64xf32>
    %18 = math.tanh %17 : vector<8x64xf32>
    %19 = vector.extract_strided_slice %16 {offsets = [0, 0], sizes = [8, 64], strides = [1, 1]} : vector<8x192xf32> to vector<8x64xf32>
    %20 = vector.extract_strided_slice %16 {offsets = [0, 64], sizes = [8, 64], strides = [1, 1]} : vector<8x192xf32> to vector<8x64xf32>
    %21 = vector.extract_strided_slice %16 {offsets = [0, 128], sizes = [8, 64], strides = [1, 1]} : vector<8x192xf32> to vector<8x64xf32>
    %22 = arith.mulf %20, %5 : vector<8x64xf32>
    %23 = arith.mulf %19, %18 : vector<8x64xf32>
    %24 = arith.addf %22, %23 : vector<8x64xf32>
    %25 = math.tanh %24 : vector<8x64xf32>
    %26 = arith.mulf %21, %25 : vector<8x64xf32>
    %c1_i32 = arith.constant 1 : i32
    %27 = arith.index_cast %c1_i32 : i32 to index
    %c0_10 = arith.constant 0 : index
    %c0_11 = arith.constant 0 : index
    %28 = vector.load %arg1[%27, %c0_10, %c0_11] : memref<8x8x256xf32, #tpu.memory_space<vmem>>, vector<1x8x256xf32>
    %29 = vector.shape_cast %28 : vector<1x8x256xf32> to vector<8x256xf32>
    %cst_12 = arith.constant dense<0.000000e+00> : vector<8x256xf32>
    %30 = tpu.matmul %26, %3, %cst_12 {dimension_numbers = #tpu.dot_dimension_numbers<[1], [0], [0], [1], [0, 0, 1, 1], [], []>} : vector<8x64xf32>, vector<64x256xf32>, vector<8x256xf32> -> vector<8x256xf32>
    %31 = arith.addf %29, %30 : vector<8x256xf32>
    %32 = vector.extract_strided_slice %31 {offsets = [0, 0], sizes = [8, 192], strides = [1, 1]} : vector<8x256xf32> to vector<8x192xf32>
    %33 = arith.negf %32 : vector<8x192xf32>
    %34 = math.exp %33 : vector<8x192xf32>
    %cst_13 = arith.constant 1.000000e+00 : f32
    %35 = vector.broadcast %cst_13 : f32 to vector<8x192xf32>
    %36 = arith.addf %35, %34 : vector<8x192xf32>
    %37 = arith.divf %35, %36 : vector<8x192xf32>
    %38 = vector.extract_strided_slice %31 {offsets = [0, 192], sizes = [8, 64], strides = [1, 1]} : vector<8x256xf32> to vector<8x64xf32>
    %39 = math.tanh %38 : vector<8x64xf32>
    %40 = vector.extract_strided_slice %37 {offsets = [0, 0], sizes = [8, 64], strides = [1, 1]} : vector<8x192xf32> to vector<8x64xf32>
    %41 = vector.extract_strided_slice %37 {offsets = [0, 64], sizes = [8, 64], strides = [1, 1]} : vector<8x192xf32> to vector<8x64xf32>
    %42 = vector.extract_strided_slice %37 {offsets = [0, 128], sizes = [8, 64], strides = [1, 1]} : vector<8x192xf32> to vector<8x64xf32>
    %43 = arith.mulf %41, %24 : vector<8x64xf32>
    %44 = arith.mulf %40, %39 : vector<8x64xf32>
    %45 = arith.addf %43, %44 : vector<8x64xf32>
    %46 = math.tanh %45 : vector<8x64xf32>
    %47 = arith.mulf %42, %46 : vector<8x64xf32>
    %c2_i32 = arith.constant 2 : i32
    %48 = arith.index_cast %c2_i32 : i32 to index
    %c0_14 = arith.constant 0 : index
    %c0_15 = arith.constant 0 : index
    %49 = vector.load %arg1[%48, %c0_14, %c0_15] : memref<8x8x256xf32, #tpu.memory_space<vmem>>, vector<1x8x256xf32>
    %50 = vector.shape_cast %49 : vector<1x8x256xf32> to vector<8x256xf32>
    %cst_16 = arith.constant dense<0.000000e+00> : vector<8x256xf32>
    %51 = tpu.matmul %47, %3, %cst_16 {dimension_numbers = #tpu.dot_dimension_numbers<[1], [0], [0], [1], [0, 0, 1, 1], [], []>} : vector<8x64xf32>, vector<64x256xf32>, vector<8x256xf32> -> vector<8x256xf32>
    %52 = arith.addf %50, %51 : vector<8x256xf32>
    %53 = vector.extract_strided_slice %52 {offsets = [0, 0], sizes = [8, 192], strides = [1, 1]} : vector<8x256xf32> to vector<8x192xf32>
    %54 = arith.negf %53 : vector<8x192xf32>
    %55 = math.exp %54 : vector<8x192xf32>
    %cst_17 = arith.constant 1.000000e+00 : f32
    %56 = vector.broadcast %cst_17 : f32 to vector<8x192xf32>
    %57 = arith.addf %56, %55 : vector<8x192xf32>
    %58 = arith.divf %56, %57 : vector<8x192xf32>
    %59 = vector.extract_strided_slice %52 {offsets = [0, 192], sizes = [8, 64], strides = [1, 1]} : vector<8x256xf32> to vector<8x64xf32>
    %60 = math.tanh %59 : vector<8x64xf32>
    %61 = vector.extract_strided_slice %58 {offsets = [0, 0], sizes = [8, 64], strides = [1, 1]} : vector<8x192xf32> to vector<8x64xf32>
    %62 = vector.extract_strided_slice %58 {offsets = [0, 64], sizes = [8, 64], strides = [1, 1]} : vector<8x192xf32> to vector<8x64xf32>
    %63 = vector.extract_strided_slice %58 {offsets = [0, 128], sizes = [8, 64], strides = [1, 1]} : vector<8x192xf32> to vector<8x64xf32>
    %64 = arith.mulf %62, %45 : vector<8x64xf32>
    %65 = arith.mulf %61, %60 : vector<8x64xf32>
    %66 = arith.addf %64, %65 : vector<8x64xf32>
    %67 = math.tanh %66 : vector<8x64xf32>
    %68 = arith.mulf %63, %67 : vector<8x64xf32>
    %c3_i32 = arith.constant 3 : i32
    %69 = arith.index_cast %c3_i32 : i32 to index
    %c0_18 = arith.constant 0 : index
    %c0_19 = arith.constant 0 : index
    %70 = vector.load %arg1[%69, %c0_18, %c0_19] : memref<8x8x256xf32, #tpu.memory_space<vmem>>, vector<1x8x256xf32>
    %71 = vector.shape_cast %70 : vector<1x8x256xf32> to vector<8x256xf32>
    %cst_20 = arith.constant dense<0.000000e+00> : vector<8x256xf32>
    %72 = tpu.matmul %68, %3, %cst_20 {dimension_numbers = #tpu.dot_dimension_numbers<[1], [0], [0], [1], [0, 0, 1, 1], [], []>} : vector<8x64xf32>, vector<64x256xf32>, vector<8x256xf32> -> vector<8x256xf32>
    %73 = arith.addf %71, %72 : vector<8x256xf32>
    %74 = vector.extract_strided_slice %73 {offsets = [0, 0], sizes = [8, 192], strides = [1, 1]} : vector<8x256xf32> to vector<8x192xf32>
    %75 = arith.negf %74 : vector<8x192xf32>
    %76 = math.exp %75 : vector<8x192xf32>
    %cst_21 = arith.constant 1.000000e+00 : f32
    %77 = vector.broadcast %cst_21 : f32 to vector<8x192xf32>
    %78 = arith.addf %77, %76 : vector<8x192xf32>
    %79 = arith.divf %77, %78 : vector<8x192xf32>
    %80 = vector.extract_strided_slice %73 {offsets = [0, 192], sizes = [8, 64], strides = [1, 1]} : vector<8x256xf32> to vector<8x64xf32>
    %81 = math.tanh %80 : vector<8x64xf32>
    %82 = vector.extract_strided_slice %79 {offsets = [0, 0], sizes = [8, 64], strides = [1, 1]} : vector<8x192xf32> to vector<8x64xf32>
    %83 = vector.extract_strided_slice %79 {offsets = [0, 64], sizes = [8, 64], strides = [1, 1]} : vector<8x192xf32> to vector<8x64xf32>
    %84 = vector.extract_strided_slice %79 {offsets = [0, 128], sizes = [8, 64], strides = [1, 1]} : vector<8x192xf32> to vector<8x64xf32>
    %85 = arith.mulf %83, %66 : vector<8x64xf32>
    %86 = arith.mulf %82, %81 : vector<8x64xf32>
    %87 = arith.addf %85, %86 : vector<8x64xf32>
    %88 = math.tanh %87 : vector<8x64xf32>
    %89 = arith.mulf %84, %88 : vector<8x64xf32>
    %c4_i32 = arith.constant 4 : i32
    %90 = arith.index_cast %c4_i32 : i32 to index
    %c0_22 = arith.constant 0 : index
    %c0_23 = arith.constant 0 : index
    %91 = vector.load %arg1[%90, %c0_22, %c0_23] : memref<8x8x256xf32, #tpu.memory_space<vmem>>, vector<1x8x256xf32>
    %92 = vector.shape_cast %91 : vector<1x8x256xf32> to vector<8x256xf32>
    %cst_24 = arith.constant dense<0.000000e+00> : vector<8x256xf32>
    %93 = tpu.matmul %89, %3, %cst_24 {dimension_numbers = #tpu.dot_dimension_numbers<[1], [0], [0], [1], [0, 0, 1, 1], [], []>} : vector<8x64xf32>, vector<64x256xf32>, vector<8x256xf32> -> vector<8x256xf32>
    %94 = arith.addf %92, %93 : vector<8x256xf32>
    %95 = vector.extract_strided_slice %94 {offsets = [0, 0], sizes = [8, 192], strides = [1, 1]} : vector<8x256xf32> to vector<8x192xf32>
    %96 = arith.negf %95 : vector<8x192xf32>
    %97 = math.exp %96 : vector<8x192xf32>
    %cst_25 = arith.constant 1.000000e+00 : f32
    %98 = vector.broadcast %cst_25 : f32 to vector<8x192xf32>
    %99 = arith.addf %98, %97 : vector<8x192xf32>
    %100 = arith.divf %98, %99 : vector<8x192xf32>
    %101 = vector.extract_strided_slice %94 {offsets = [0, 192], sizes = [8, 64], strides = [1, 1]} : vector<8x256xf32> to vector<8x64xf32>
    %102 = math.tanh %101 : vector<8x64xf32>
    %103 = vector.extract_strided_slice %100 {offsets = [0, 0], sizes = [8, 64], strides = [1, 1]} : vector<8x192xf32> to vector<8x64xf32>
    %104 = vector.extract_strided_slice %100 {offsets = [0, 64], sizes = [8, 64], strides = [1, 1]} : vector<8x192xf32> to vector<8x64xf32>
    %105 = vector.extract_strided_slice %100 {offsets = [0, 128], sizes = [8, 64], strides = [1, 1]} : vector<8x192xf32> to vector<8x64xf32>
    %106 = arith.mulf %104, %87 : vector<8x64xf32>
    %107 = arith.mulf %103, %102 : vector<8x64xf32>
    %108 = arith.addf %106, %107 : vector<8x64xf32>
    %109 = math.tanh %108 : vector<8x64xf32>
    %110 = arith.mulf %105, %109 : vector<8x64xf32>
    %c5_i32 = arith.constant 5 : i32
    %111 = arith.index_cast %c5_i32 : i32 to index
    %c0_26 = arith.constant 0 : index
    %c0_27 = arith.constant 0 : index
    %112 = vector.load %arg1[%111, %c0_26, %c0_27] : memref<8x8x256xf32, #tpu.memory_space<vmem>>, vector<1x8x256xf32>
    %113 = vector.shape_cast %112 : vector<1x8x256xf32> to vector<8x256xf32>
    %cst_28 = arith.constant dense<0.000000e+00> : vector<8x256xf32>
    %114 = tpu.matmul %110, %3, %cst_28 {dimension_numbers = #tpu.dot_dimension_numbers<[1], [0], [0], [1], [0, 0, 1, 1], [], []>} : vector<8x64xf32>, vector<64x256xf32>, vector<8x256xf32> -> vector<8x256xf32>
    %115 = arith.addf %113, %114 : vector<8x256xf32>
    %116 = vector.extract_strided_slice %115 {offsets = [0, 0], sizes = [8, 192], strides = [1, 1]} : vector<8x256xf32> to vector<8x192xf32>
    %117 = arith.negf %116 : vector<8x192xf32>
    %118 = math.exp %117 : vector<8x192xf32>
    %cst_29 = arith.constant 1.000000e+00 : f32
    %119 = vector.broadcast %cst_29 : f32 to vector<8x192xf32>
    %120 = arith.addf %119, %118 : vector<8x192xf32>
    %121 = arith.divf %119, %120 : vector<8x192xf32>
    %122 = vector.extract_strided_slice %115 {offsets = [0, 192], sizes = [8, 64], strides = [1, 1]} : vector<8x256xf32> to vector<8x64xf32>
    %123 = math.tanh %122 : vector<8x64xf32>
    %124 = vector.extract_strided_slice %121 {offsets = [0, 0], sizes = [8, 64], strides = [1, 1]} : vector<8x192xf32> to vector<8x64xf32>
    %125 = vector.extract_strided_slice %121 {offsets = [0, 64], sizes = [8, 64], strides = [1, 1]} : vector<8x192xf32> to vector<8x64xf32>
    %126 = vector.extract_strided_slice %121 {offsets = [0, 128], sizes = [8, 64], strides = [1, 1]} : vector<8x192xf32> to vector<8x64xf32>
    %127 = arith.mulf %125, %108 : vector<8x64xf32>
    %128 = arith.mulf %124, %123 : vector<8x64xf32>
    %129 = arith.addf %127, %128 : vector<8x64xf32>
    %130 = math.tanh %129 : vector<8x64xf32>
    %131 = arith.mulf %126, %130 : vector<8x64xf32>
    %c6_i32 = arith.constant 6 : i32
    %132 = arith.index_cast %c6_i32 : i32 to index
    %c0_30 = arith.constant 0 : index
    %c0_31 = arith.constant 0 : index
    %133 = vector.load %arg1[%132, %c0_30, %c0_31] : memref<8x8x256xf32, #tpu.memory_space<vmem>>, vector<1x8x256xf32>
    %134 = vector.shape_cast %133 : vector<1x8x256xf32> to vector<8x256xf32>
    %cst_32 = arith.constant dense<0.000000e+00> : vector<8x256xf32>
    %135 = tpu.matmul %131, %3, %cst_32 {dimension_numbers = #tpu.dot_dimension_numbers<[1], [0], [0], [1], [0, 0, 1, 1], [], []>} : vector<8x64xf32>, vector<64x256xf32>, vector<8x256xf32> -> vector<8x256xf32>
    %136 = arith.addf %134, %135 : vector<8x256xf32>
    %137 = vector.extract_strided_slice %136 {offsets = [0, 0], sizes = [8, 192], strides = [1, 1]} : vector<8x256xf32> to vector<8x192xf32>
    %138 = arith.negf %137 : vector<8x192xf32>
    %139 = math.exp %138 : vector<8x192xf32>
    %cst_33 = arith.constant 1.000000e+00 : f32
    %140 = vector.broadcast %cst_33 : f32 to vector<8x192xf32>
    %141 = arith.addf %140, %139 : vector<8x192xf32>
    %142 = arith.divf %140, %141 : vector<8x192xf32>
    %143 = vector.extract_strided_slice %136 {offsets = [0, 192], sizes = [8, 64], strides = [1, 1]} : vector<8x256xf32> to vector<8x64xf32>
    %144 = math.tanh %143 : vector<8x64xf32>
    %145 = vector.extract_strided_slice %142 {offsets = [0, 0], sizes = [8, 64], strides = [1, 1]} : vector<8x192xf32> to vector<8x64xf32>
    %146 = vector.extract_strided_slice %142 {offsets = [0, 64], sizes = [8, 64], strides = [1, 1]} : vector<8x192xf32> to vector<8x64xf32>
    %147 = vector.extract_strided_slice %142 {offsets = [0, 128], sizes = [8, 64], strides = [1, 1]} : vector<8x192xf32> to vector<8x64xf32>
    %148 = arith.mulf %146, %129 : vector<8x64xf32>
    %149 = arith.mulf %145, %144 : vector<8x64xf32>
    %150 = arith.addf %148, %149 : vector<8x64xf32>
    %151 = math.tanh %150 : vector<8x64xf32>
    %152 = arith.mulf %147, %151 : vector<8x64xf32>
    %c7_i32 = arith.constant 7 : i32
    %153 = arith.index_cast %c7_i32 : i32 to index
    %c0_34 = arith.constant 0 : index
    %c0_35 = arith.constant 0 : index
    %154 = vector.load %arg1[%153, %c0_34, %c0_35] : memref<8x8x256xf32, #tpu.memory_space<vmem>>, vector<1x8x256xf32>
    %155 = vector.shape_cast %154 : vector<1x8x256xf32> to vector<8x256xf32>
    %cst_36 = arith.constant dense<0.000000e+00> : vector<8x256xf32>
    %156 = tpu.matmul %152, %3, %cst_36 {dimension_numbers = #tpu.dot_dimension_numbers<[1], [0], [0], [1], [0, 0, 1, 1], [], []>} : vector<8x64xf32>, vector<64x256xf32>, vector<8x256xf32> -> vector<8x256xf32>
    %157 = arith.addf %155, %156 : vector<8x256xf32>
    %158 = vector.extract_strided_slice %157 {offsets = [0, 0], sizes = [8, 192], strides = [1, 1]} : vector<8x256xf32> to vector<8x192xf32>
    %159 = arith.negf %158 : vector<8x192xf32>
    %160 = math.exp %159 : vector<8x192xf32>
    %cst_37 = arith.constant 1.000000e+00 : f32
    %161 = vector.broadcast %cst_37 : f32 to vector<8x192xf32>
    %162 = arith.addf %161, %160 : vector<8x192xf32>
    %163 = arith.divf %161, %162 : vector<8x192xf32>
    %164 = vector.extract_strided_slice %157 {offsets = [0, 192], sizes = [8, 64], strides = [1, 1]} : vector<8x256xf32> to vector<8x64xf32>
    %165 = math.tanh %164 : vector<8x64xf32>
    %166 = vector.extract_strided_slice %163 {offsets = [0, 0], sizes = [8, 64], strides = [1, 1]} : vector<8x192xf32> to vector<8x64xf32>
    %167 = vector.extract_strided_slice %163 {offsets = [0, 64], sizes = [8, 64], strides = [1, 1]} : vector<8x192xf32> to vector<8x64xf32>
    %168 = vector.extract_strided_slice %163 {offsets = [0, 128], sizes = [8, 64], strides = [1, 1]} : vector<8x192xf32> to vector<8x64xf32>
    %169 = arith.mulf %167, %150 : vector<8x64xf32>
    %170 = arith.mulf %166, %165 : vector<8x64xf32>
    %171 = arith.addf %169, %170 : vector<8x64xf32>
    %172 = math.tanh %171 : vector<8x64xf32>
    %173 = arith.mulf %168, %172 : vector<8x64xf32>
    %c8_i32 = arith.constant 8 : i32
    %c0_38 = arith.constant 0 : index
    %c0_39 = arith.constant 0 : index
    %174 = vector.load %arg6[%c0_38, %c0_39] : memref<8x64xf32, #tpu.memory_space<vmem>>, vector<8x64xf32>
    tpu.vector_store %arg6[%c0_38, %c0_39], %173 {strides = array<i32>} : memref<8x64xf32, #tpu.memory_space<vmem>>, vector<8x64xf32>,
    %c0_40 = arith.constant 0 : index
    %c0_41 = arith.constant 0 : index
    %175 = vector.load %arg7[%c0_40, %c0_41] : memref<8x64xf32, #tpu.memory_space<vmem>>, vector<8x64xf32>
    tpu.vector_store %arg7[%c0_40, %c0_41], %171 {strides = array<i32>} : memref<8x64xf32, #tpu.memory_space<vmem>>, vector<8x64xf32>,
    %c0_i32_42 = arith.constant 0 : i32
    %176 = arith.cmpi eq, %arg0, %c0_i32_42 : i32
    %177 = arith.extui %176 : i1 to i32
    %c0_i32_43 = arith.constant 0 : i32
    %178 = arith.cmpi ne, %177, %c0_i32_43 : i32
    scf.if %178 {
      %c0_44 = arith.constant 0 : index
      %c0_45 = arith.constant 0 : index
      %179 = vector.load %arg3[%c0_44, %c0_45] : memref<64x1xf32, #tpu.memory_space<vmem>>, vector<64x1xf32>
      %cst_46 = arith.constant dense<0.000000e+00> : vector<8x1xf32>
      %180 = tpu.matmul %173, %179, %cst_46 {dimension_numbers = #tpu.dot_dimension_numbers<[1], [0], [0], [1], [0, 0, 1, 1], [], []>} : vector<8x64xf32>, vector<64x1xf32>, vector<8x1xf32> -> vector<8x1xf32>
      %c0_47 = arith.constant 0 : index
      %c0_48 = arith.constant 0 : index
      %181 = vector.load %arg4[%c0_47, %c0_48] : memref<1x1xf32, #tpu.memory_space<vmem>>, vector<1x1xf32>
      %182 = vector.broadcast %181 : vector<1x1xf32> to vector<8x1xf32>
      %183 = arith.addf %180, %182 : vector<8x1xf32>
      %184 = arith.negf %183 : vector<8x1xf32>
      %185 = math.exp %184 : vector<8x1xf32>
      %cst_49 = arith.constant 1.000000e+00 : f32
      %186 = vector.broadcast %cst_49 : f32 to vector<8x1xf32>
      %187 = arith.addf %186, %185 : vector<8x1xf32>
      %188 = arith.divf %186, %187 : vector<8x1xf32>
      %c0_50 = arith.constant 0 : index
      %c0_51 = arith.constant 0 : index
      %189 = vector.load %arg5[%c0_50, %c0_51] : memref<8x1xf32, #tpu.memory_space<vmem>>, vector<8x1xf32>
      tpu.vector_store %arg5[%c0_50, %c0_51], %188 {strides = array<i32>} : memref<8x1xf32, #tpu.memory_space<vmem>>, vector<8x1xf32>,
    } else {
    }
    return
  }
  func.func @transform_0(%arg0: i32) -> (i32, i32, i32) {
    %c0_i32 = arith.constant 0 : i32
    %c0_i32_0 = arith.constant 0 : i32
    %c0_i32_1 = arith.constant 0 : i32
    return %arg0, %c0_i32, %c0_i32_0 : i32, i32, i32
  }
  func.func @transform_1(%arg0: i32) -> (i32, i32) {
    %c0_i32 = arith.constant 0 : i32
    %c0_i32_0 = arith.constant 0 : i32
    %c0_i32_1 = arith.constant 0 : i32
    return %c0_i32, %c0_i32_0 : i32, i32
  }
  func.func @transform_2(%arg0: i32) -> (i32, i32) {
    %c0_i32 = arith.constant 0 : i32
    %c0_i32_0 = arith.constant 0 : i32
    %c0_i32_1 = arith.constant 0 : i32
    return %c0_i32, %c0_i32_0 : i32, i32
  }
  func.func @transform_3(%arg0: i32) -> (i32, i32) {
    %c0_i32 = arith.constant 0 : i32
    %c0_i32_0 = arith.constant 0 : i32
    %c0_i32_1 = arith.constant 0 : i32
    return %c0_i32, %c0_i32_0 : i32, i32
  }
  func.func @transform_4(%arg0: i32) -> (i32, i32) {
    %c0_i32 = arith.constant 0 : i32
    %c0_i32_0 = arith.constant 0 : i32
    %c0_i32_1 = arith.constant 0 : i32
    return %c0_i32, %c0_i32_0 : i32, i32
  }
}

</mosaic_0001>

<bundles_post_ra>
// kernel: tpu_custom_call.1
= control target key start
LH: loop header
LB: loop body
LE: loop exit
PB: predicated region body
PF: predicated region fallthrough
CT: control target
= control target key end

     0   :  { %s1627_s0 = inlined_call_operand.hbm [shape: f32[8,8,256], index: 0, kind: input, shape index: {}]   ;;  %s1628_s1 = inlined_call_operand.hbm [shape: f32[64,256], index: 1, kind: input, shape index: {}]   ;;  %s1629_s2 = inlined_call_operand.vmem [shape: f32[64,1], index: 2, kind: input, shape index: {}]   ;;  %s1630_s3 = inlined_call_operand.<no memory space> [shape: f32[1,1], index: 3, kind: input, shape index: {}]   ;;  %s1631_s4 = inlined_call_operand.vmem [shape: f32[8,1], index: 4, kind: output, shape index: {}]  }
   0x1   :  { %v9_v0 = vstv %s1630_s3 }
   0x2   :  { %10 = vst [vmem:[#allocation4] sm:$0x1] %v9_v0 }
   0x3   :  { %11 = vsyncpa [#allocation6], 0 }
   0x4   :  { %12 = vsyncpa [#allocation8], 0  ;;  %s1410_s17 = smov [#allocation5]   ;;  %s1362_s21 = scalar_lea.hbm %s1627_s0, 2048 }
   0x5   :  { %s18_s18 = sshll.u32 %s1410_s17, 4  ;;  %p1363_p0 = scmp.ne.s32.totalorder %s1627_s0, %s1362_s21  ;;  %s19_s18 = int_to_ptr.vmem [resolvable:$true] %s18_s18 }
   0x6   :  { %p1366_p1 = scmp.lt.u32.totalorder %s1362_s21, %s1627_s0 }
   0x8   :  { %p1368_p2 = pnand %p1366_p1, %p1363_p0 }
   0xa   :  { %1371 = shalt.err (!%p1368_p2)
}
   0xb   :  { %s1372_s3 = scalar_lea.vmem %s19_s18, 2048  ;;  %p1377_p4 = scmp.lt.s32.totalorder %s19_s18, %s19_s18 }
   0xc   :  { %p1373_p3 = scmp.ne.s32.totalorder %s19_s18, %s1372_s3  ;;  %p1378_p5 = scmp.lt.s32.totalorder %s1372_s3, %s1372_s3 }
   0xe   :  { %p1379_p6 = por %p1378_p5, %p1377_p4 }
  0x10   :  { %p1380_p7 = pnand %p1379_p6, %p1373_p3 }
  0x12   :  { %1383 = shalt.err (!%p1380_p7)
}
  0x13   :  { %s1411_s26 = smov 256   ;;  %s1412_s27 = smov 16  }
  0x14   :  { %24 = dma.hbm_to_vmem [thread:$0]  %s1627_s0, 2048, %s19_s18, [#allocation6], %s1411_s26, %s1411_s26, %s1412_s27  }
  0x15   :  { %s1413_s30 = smov [#allocation7]   ;;  %s1384_s8 = scalar_lea.hbm %s1628_s1, 2048 }
  0x16   :  { %s30_s5 = sshll.u32 %s1413_s30, 4  ;;  %p1385_p8 = scmp.ne.s32.totalorder %s1628_s1, %s1384_s8  ;;  %s31_s5 = int_to_ptr.vmem [resolvable:$true] %s30_s5 }
  0x17   :  { %p1388_p9 = scmp.lt.u32.totalorder %s1384_s8, %s1628_s1 }
  0x19   :  { %p1390_p10 = pnand %p1388_p9, %p1385_p8 }
  0x1b   :  { %1393 = shalt.err (!%p1390_p10)
}
  0x1c   :  { %s1394_s13 = scalar_lea.vmem %s31_s5, 2048  ;;  %p1399_p12 = scmp.lt.s32.totalorder %s31_s5, %s31_s5 }
  0x1d   :  { %p1395_p11 = scmp.ne.s32.totalorder %s31_s5, %s1394_s13  ;;  %p1400_p13 = scmp.lt.s32.totalorder %s1394_s13, %s1394_s13 }
  0x1f   :  { %p1401_p0 = por %p1400_p13, %p1399_p12 }
  0x21   :  { %p1402_p1 = pnand %p1401_p0, %p1395_p11 }
  0x23   :  { %1405 = shalt.err (!%p1402_p1)
}
  0x24   :  { %36 = dma.hbm_to_vmem [thread:$0]  %s1628_s1, 2048, %s31_s5, [#allocation8], %s1411_s26, %s1411_s26, %s1412_s27  }
  0x25   :  { %1406 = dma.done.wait [#allocation6], 2048  }
  0x26   :  { %1407 = vsyncadd [#allocation6], 4294965248 }
  0x27   :  { %1408 = dma.done.wait [#allocation8], 2048  }
  0x28   :  { %1409 = vsyncadd [#allocation8], 4294965248  ;;  %vm51_vm0 = vcmask 523264   ;;  %v1414_v1 = vmov 0.0   ;;  %v55_v2 = vld [vmem:[#allocation7 + $0x8] sm:$0xff]  ;;  %v57_v3 = vld [vmem:[#allocation7 + $0x18] sm:$0xff] }
  0x29   :  { %142 = vmatprep.mubr.f32.mxu0 %v1414_v1  ;;  %52 = vst.msk [vmem:[#allocation2] sm:$0xff] %vm51_vm0, %v1414_v1  ;;  %53 = vst.msk [vmem:[#allocation3] sm:$0xff] %vm51_vm0, %v1414_v1  ;;  %255 = vmatprep.mubr.f32.mxu1 %v1414_v1  ;;  %v54_v4 = vld [vmem:[#allocation7] sm:$0xff]  ;;  %v1476_v5 = vpack.c.bf16 %v57_v3, %v55_v2  ;;  %v56_v6 = vld [vmem:[#allocation7 + $0x10] sm:$0xff]  ;;  %s1415_s1 = smov 64   ;;  %vm1417_vm1 = vmmov 0  }
  0x2a   :  { %v59_v7 = vld [vmem:[#allocation7 + $0x28] sm:$0xff]  ;;  %v61_v8 = vld [vmem:[#allocation7 + $0x38] sm:$0xff]  ;;  %v1478_v9 = vpack.c.bf16 %v56_v6, %v54_v4  ;;  %v58_v11 = vld [vmem:[#allocation7 + $0x20] sm:$0xff]  ;;  %vm1051_vm2 = vcmask 7168  }
  0x2b   :  { %v1480_v10 = vpack.c.bf16 %v61_v8, %v59_v7  ;;  %v60_v12 = vld [vmem:[#allocation7 + $0x30] sm:$0xff]  ;;  %v63_v13 = vld [vmem:[#allocation7 + $0x48] sm:$0xff]  ;;  %1115 = vmatprep.subr.bf16.mxu0 %v1476_v5  ;;  %v65_v14 = vld [vmem:[#allocation7 + $0x58] sm:$0xff]  ;;  %1131 = vmatprep.subr.bf16.mxu1 %v1476_v5 }
  0x2c   :  { %1117 = vmatpush1.bf16.msra.mxu0 %v1478_v9  ;;  %v1485_v15 = vpack.c.bf16 %v60_v12, %v58_v11  ;;  %1133 = vmatpush1.bf16.msra.mxu1 %v1478_v9  ;;  %v1489_v16 = vpack.c.bf16 %v65_v14, %v63_v13  ;;  %v62_v17 = vld [vmem:[#allocation7 + $0x40] sm:$0xff]  ;;  %v64_v18 = vld [vmem:[#allocation7 + $0x50] sm:$0xff]  ;;  %v67_v19 = vld [vmem:[#allocation7 + $0x68] sm:$0xff] }
  0x2d   :  { %1119 = vmatprep.subr.bf16.mxu0 %v1480_v10  ;;  %1135 = vmatprep.subr.bf16.mxu1 %v1480_v10  ;;  %v69_v20 = vld [vmem:[#allocation7 + $0x78] sm:$0xff]  ;;  %v1493_v21 = vpack.c.bf16 %v64_v18, %v62_v17  ;;  %v66_v23 = vld [vmem:[#allocation7 + $0x60] sm:$0xff]  ;;  %v68_v24 = vld [vmem:[#allocation7 + $0x70] sm:$0xff] }
  0x2e   :  { %v1497_v22 = vpack.c.bf16 %v69_v20, %v67_v19  ;;  %v1501_v25 = vpack.c.bf16 %v68_v24, %v66_v23  ;;  %v73_v27 = vld [vmem:[#allocation5 + $0x8] sm:$0xff]  ;;  %v72_v33 = vld [vmem:[#allocation5] sm:$0xff]  ;;  %v187_v52 = vld [vmem:[#allocation5 + $0x18] sm:$0xff] }
  0x2f   :  { %v186_v57 = vld [vmem:[#allocation5 + $0x10] sm:$0xff]  ;;  %v296_v17 = vld [vmem:[#allocation5 + $0x28] sm:$0xff]  ;;  %v295_v24 = vld [vmem:[#allocation5 + $0x20] sm:$0xff] }
  0x30   :  { %1121 = vmatpush1.bf16.msra.mxu0 %v1485_v15  ;;  %1137 = vmatpush1.bf16.msra.mxu1 %v1485_v15  ;;  %v70_v26 = vld [vmem:[#allocation2] sm:$0xff]  ;;  %v71_v32 = vld [vmem:[#allocation3] sm:$0xff] }
  0x31   :  { %1123 = vmatprep.subr.bf16.mxu0 %v1489_v16  ;;  %1139 = vmatprep.subr.bf16.mxu1 %v1489_v16 }
  0x34   :  { %1125 = vmatpush1.bf16.msra.mxu0 %v1493_v21  ;;  %1141 = vmatpush1.bf16.msra.mxu1 %v1493_v21 }
  0x35   :  { %1127 = vmatprep.subr.bf16.mxu0 %v1497_v22  ;;  %1143 = vmatprep.subr.bf16.mxu1 %v1497_v22 }
  0x38   :  { %1129 = vmatpush1.bf16.msra.mxu0 %v1501_v25  ;;  %1145 = vmatpush1.bf16.msra.mxu1 %v1501_v25 }
  0x39   :  { %1147 = vmatprep.subr.bf16.mxu0 %v1476_v5  ;;  %1163 = vmatprep.subr.bf16.mxu1 %v1476_v5 }
  0x3b   :  { %1059 = vmatmul.mubr.msk.f32.vlgmr.msra.gmra.mrb[0].mxu0 %vm51_vm0, %v70_v26 }
  0x3c   :  { %1149 = vmatpush1.bf16.msra.mxu0 %v1478_v9  ;;  %364 = vmatprep.mubr.f32.mxu0 %v1414_v1 }
  0x3d   :  { %1151 = vmatprep.subr.bf16.mxu0 %v1480_v10 }
  0x40   :  { %1153 = vmatpush1.bf16.msra.mxu0 %v1485_v15 }
  0x41   :  { %1155 = vmatprep.subr.bf16.mxu0 %v1489_v16 }
  0x44   :  { %1157 = vmatpush1.bf16.msra.mxu0 %v1493_v21 }
  0x45   :  { %1159 = vmatprep.subr.bf16.mxu0 %v1497_v22 }
  0x48   :  { %1161 = vmatpush1.bf16.msra.mxu0 %v1501_v25 }
  0x49   :  { %1179 = vmatprep.subr.bf16.mxu0 %v1476_v5 }
 0x10e   :  { %v144_v28 = vpop.f32.mrb[0].mxu0 }
 0x10f   :  { %v146_v29 = vpop.f32.mrb[1].mxu0  ;;  %v149_v34 = vadd.f32 %v144_v28, %v72_v33 }
 0x110   :  { %v150_v30 = vadd.f32 %v146_v29, %v73_v27 }
 0x111   :  { %v1060_v35 = vmul.f32 -1.442695, %v149_v34 }
 0x112   :  { %1262 = vtanh.f32 %v150_v30  ;;  %v1061_v46 = vmul.f32 -1.442695, %v150_v30 }
 0x113   :  { %1264 = vpow2.f32 %v1060_v35 }
 0x11c   :  { %v1263_v31 = vpop.eup %1262 }
 0x11d   :  { %170 = vrot.lane.b32.xlu0 %v1263_v31, %s1415_s1  ;;  %v1265_v36 = vpop.eup %1264 }
 0x11e   :  { %v157_v37 = vadd.f32 1.0, %v1265_v36 }
 0x120   :  { %1266 = vrcp.f32 %v157_v37 }
 0x121   :  { %165 = vrot.lane.b32.xlu0 %v71_v32, %s1415_s1 }
 0x12a   :  { %v1267_v38 = vpop.eup %1266 }
 0x18f   :  { %v171_v39 = vpop.permute.xlu0 %170 }
 0x190   :  { %v173_v40 = vmul.f32 %v1267_v38, %v171_v39 }
 0x192   :  { %175 = vrot.lane.b32.xlu1 %v173_v40, %s1415_s1 }
 0x193   :  { %v166_v41 = vpop.permute.xlu0 %165 }
 0x194   :  { %v168_v42 = vmul.f32 %v1267_v38, %v166_v41 }
 0x204   :  { %v176_v43 = vpop.permute.xlu1 %175 }
 0x205   :  { %v178_v44 = vadd.f32 %v176_v43, %v168_v42  ;;  %v405_v43 = vld [vmem:[#allocation5 + $0x38] sm:$0xff] }
 0x207   :  { %1268 = vtanh.f32 %v178_v44 }
 0x208   :  { %1270 = vpow2.f32 %v1061_v46 }
 0x211   :  { %v1269_v45 = vpop.eup %1268 }
 0x212   :  { %181 = vrot.lane.b32.xlu1 %v1269_v45, %s1415_s1  ;;  %v1271_v47 = vpop.eup %1270 }
 0x213   :  { %v158_v48 = vadd.f32 1.0, %v1271_v47 }
 0x215   :  { %1272 = vrcp.f32 %v158_v48  ;;  %v404_v48 = vld [vmem:[#allocation5 + $0x30] sm:$0xff] }
 0x21f   :  { %v1273_v49 = vpop.eup %1272 }
 0x284   :  { %v182_v50 = vpop.permute.xlu1 %181 }
 0x285   :  { %v184_v51 = vmul.f32 %v1273_v49, %v182_v50 }
 0x287   :  { %1062 = vmatmul.mubr.msk.f32.vlgmr.msra.gmra.mrb[0].mxu1 %vm51_vm0, %v184_v51 }
 0x288   :  { %1165 = vmatpush1.bf16.msra.mxu1 %v1478_v9  ;;  %473 = vmatprep.mubr.f32.mxu1 %v1414_v1 }
 0x289   :  { %1167 = vmatprep.subr.bf16.mxu1 %v1480_v10 }
 0x28c   :  { %1169 = vmatpush1.bf16.msra.mxu1 %v1485_v15 }
 0x28d   :  { %1171 = vmatprep.subr.bf16.mxu1 %v1489_v16 }
 0x290   :  { %1173 = vmatpush1.bf16.msra.mxu1 %v1493_v21 }
 0x291   :  { %1175 = vmatprep.subr.bf16.mxu1 %v1497_v22 }
 0x294   :  { %1177 = vmatpush1.bf16.msra.mxu1 %v1501_v25 }
 0x295   :  { %1195 = vmatprep.subr.bf16.mxu1 %v1476_v5 }
 0x35a   :  { %v257_v53 = vpop.f32.mrb[0].mxu1 }
 0x35b   :  { %v259_v54 = vpop.f32.mrb[1].mxu1  ;;  %v262_v58 = vadd.f32 %v257_v53, %v186_v57 }
 0x35c   :  { %v263_v55 = vadd.f32 %v259_v54, %v187_v52 }
 0x35d   :  { %v1063_v59 = vmul.f32 -1.442695, %v262_v58 }
 0x35e   :  { %1274 = vtanh.f32 %v263_v55  ;;  %v1064_v7 = vmul.f32 -1.442695, %v263_v55 }
 0x35f   :  { %1276 = vpow2.f32 %v1063_v59 }
 0x368   :  { %v1275_v56 = vpop.eup %1274 }
 0x369   :  { %279 = vrot.lane.b32.xlu0 %v1275_v56, %s1415_s1  ;;  %v1277_v60 = vpop.eup %1276 }
 0x36a   :  { %v270_v61 = vadd.f32 1.0, %v1277_v60 }
 0x36c   :  { %1278 = vrcp.f32 %v270_v61 }
 0x376   :  { %v1279_v62 = vpop.eup %1278 }
 0x377   :  { %v277_v2 = vmul.f32 %v1279_v62, %v178_v44 }
 0x3db   :  { %v280_v63 = vpop.permute.xlu0 %279 }
 0x3dc   :  { %v282_v0 = vmul.f32 %v1279_v62, %v280_v63 }
 0x3de   :  { %284 = vrot.lane.b32.xlu1 %v282_v0, %s1415_s1 }
 0x450   :  { %v285_v3 = vpop.permute.xlu1 %284 }
 0x451   :  { %v287_v4 = vadd.f32 %v285_v3, %v277_v2  ;;  %v514_v2 = vld [vmem:[#allocation5 + $0x48] sm:$0xff] }
 0x453   :  { %1280 = vtanh.f32 %v287_v4 }
 0x454   :  { %1282 = vpow2.f32 %v1064_v7 }
 0x45d   :  { %v1281_v6 = vpop.eup %1280 }
 0x45e   :  { %290 = vrot.lane.b32.xlu0 %v1281_v6, %s1415_s1  ;;  %v1283_v8 = vpop.eup %1282 }
 0x45f   :  { %v271_v11 = vadd.f32 1.0, %v1283_v8  ;;  %v513_v8 = vld [vmem:[#allocation5 + $0x40] sm:$0xff] }
 0x461   :  { %1284 = vrcp.f32 %v271_v11 }
 0x46b   :  { %v1285_v12 = vpop.eup %1284 }
 0x4d0   :  { %v291_v13 = vpop.permute.xlu0 %290 }
 0x4d1   :  { %v293_v14 = vmul.f32 %v1285_v12, %v291_v13 }
 0x4d3   :  { %1065 = vmatmul.mubr.msk.f32.vlgmr.msra.gmra.mrb[2].mxu0 %vm51_vm0, %v293_v14 }
 0x4d4   :  { %1181 = vmatpush1.bf16.msra.mxu0 %v1478_v9  ;;  %582 = vmatprep.mubr.f32.mxu0 %v1414_v1 }
 0x4d5   :  { %1183 = vmatprep.subr.bf16.mxu0 %v1480_v10 }
 0x4d8   :  { %1185 = vmatpush1.bf16.msra.mxu0 %v1485_v15 }
 0x4d9   :  { %1187 = vmatprep.subr.bf16.mxu0 %v1489_v16 }
 0x4dc   :  { %1189 = vmatpush1.bf16.msra.mxu0 %v1493_v21 }
 0x4dd   :  { %1191 = vmatprep.subr.bf16.mxu0 %v1497_v22 }
 0x4e0   :  { %1193 = vmatpush1.bf16.msra.mxu0 %v1501_v25 }
 0x4e1   :  { %1211 = vmatprep.subr.bf16.mxu0 %v1476_v5 }
 0x5a6   :  { %v366_v18 = vpop.f32.mrb[2].mxu0 }
 0x5a7   :  { %v368_v19 = vpop.f32.mrb[3].mxu0  ;;  %v371_v26 = vadd.f32 %v366_v18, %v295_v24 }
 0x5a8   :  { %v372_v20 = vadd.f32 %v368_v19, %v296_v17 }
 0x5a9   :  { %v1066_v27 = vmul.f32 -1.442695, %v371_v26 }
 0x5aa   :  { %1286 = vtanh.f32 %v372_v20  ;;  %v1067_v37 = vmul.f32 -1.442695, %v372_v20 }
 0x5ab   :  { %1288 = vpow2.f32 %v1066_v27 }
 0x5b4   :  { %v1287_v23 = vpop.eup %1286 }
 0x5b5   :  { %388 = vrot.lane.b32.xlu1 %v1287_v23, %s1415_s1  ;;  %v1289_v28 = vpop.eup %1288 }
 0x5b6   :  { %v379_v29 = vadd.f32 1.0, %v1289_v28 }
 0x5b8   :  { %1290 = vrcp.f32 %v379_v29 }
 0x5c2   :  { %v1291_v30 = vpop.eup %1290 }
 0x5c3   :  { %v386_v33 = vmul.f32 %v1291_v30, %v287_v4 }
 0x627   :  { %v389_v31 = vpop.permute.xlu1 %388 }
 0x628   :  { %v391_v32 = vmul.f32 %v1291_v30, %v389_v31 }
 0x62a   :  { %393 = vrot.lane.b32.xlu0 %v391_v32, %s1415_s1 }
 0x69c   :  { %v394_v34 = vpop.permute.xlu0 %393 }
 0x69d   :  { %v396_v35 = vadd.f32 %v394_v34, %v386_v33  ;;  %v623_v33 = vld [vmem:[#allocation5 + $0x58] sm:$0xff] }
 0x69f   :  { %1292 = vtanh.f32 %v396_v35 }
 0x6a0   :  { %1294 = vpow2.f32 %v1067_v37  ;;  %v622_v37 = vld [vmem:[#allocation5 + $0x50] sm:$0xff] }
 0x6a9   :  { %v1293_v36 = vpop.eup %1292 }
 0x6aa   :  { %399 = vrot.lane.b32.xlu1 %v1293_v36, %s1415_s1  ;;  %v1295_v38 = vpop.eup %1294 }
 0x6ab   :  { %v380_v39 = vadd.f32 1.0, %v1295_v38 }
 0x6ad   :  { %1296 = vrcp.f32 %v380_v39 }
 0x6b7   :  { %v1297_v40 = vpop.eup %1296 }
 0x71c   :  { %v400_v41 = vpop.permute.xlu1 %399 }
 0x71d   :  { %v402_v42 = vmul.f32 %v1297_v40, %v400_v41 }
 0x71f   :  { %1068 = vmatmul.mubr.msk.f32.vlgmr.msra.gmra.mrb[2].mxu1 %vm51_vm0, %v402_v42 }
 0x720   :  { %1197 = vmatpush1.bf16.msra.mxu1 %v1478_v9  ;;  %691 = vmatprep.mubr.f32.mxu1 %v1414_v1 }
 0x721   :  { %1199 = vmatprep.subr.bf16.mxu1 %v1480_v10 }
 0x724   :  { %1201 = vmatpush1.bf16.msra.mxu1 %v1485_v15 }
 0x725   :  { %1203 = vmatprep.subr.bf16.mxu1 %v1489_v16 }
 0x728   :  { %1205 = vmatpush1.bf16.msra.mxu1 %v1493_v21 }
 0x729   :  { %1207 = vmatprep.subr.bf16.mxu1 %v1497_v22 }
 0x72c   :  { %1209 = vmatpush1.bf16.msra.mxu1 %v1501_v25 }
 0x72d   :  { %1227 = vmatprep.subr.bf16.mxu1 %v1476_v5 }
 0x7f2   :  { %v475_v44 = vpop.f32.mrb[2].mxu1 }
 0x7f3   :  { %v477_v45 = vpop.f32.mrb[3].mxu1  ;;  %v480_v49 = vadd.f32 %v475_v44, %v404_v48 }
 0x7f4   :  { %v481_v46 = vadd.f32 %v477_v45, %v405_v43 }
 0x7f5   :  { %v1069_v50 = vmul.f32 -1.442695, %v480_v49  ;;  %v732_v49 = vld [vmem:[#allocation5 + $0x68] sm:$0xff] }
 0x7f6   :  { %1298 = vtanh.f32 %v481_v46  ;;  %v1070_v59 = vmul.f32 -1.442695, %v481_v46 }
 0x7f7   :  { %1300 = vpow2.f32 %v1069_v50 }
 0x800   :  { %v1299_v47 = vpop.eup %1298 }
 0x801   :  { %497 = vrot.lane.b32.xlu0 %v1299_v47, %s1415_s1  ;;  %v1301_v51 = vpop.eup %1300 }
 0x802   :  { %v488_v52 = vadd.f32 1.0, %v1301_v51 }
 0x804   :  { %1302 = vrcp.f32 %v488_v52 }
 0x80e   :  { %v1303_v53 = vpop.eup %1302 }
 0x80f   :  { %v495_v5 = vmul.f32 %v1303_v53, %v396_v35 }
 0x873   :  { %v498_v54 = vpop.permute.xlu0 %497 }
 0x874   :  { %v500_v55 = vmul.f32 %v1303_v53, %v498_v54  ;;  %v731_v54 = vld [vmem:[#allocation5 + $0x60] sm:$0xff] }
 0x876   :  { %502 = vrot.lane.b32.xlu1 %v500_v55, %s1415_s1 }
 0x8e8   :  { %v503_v56 = vpop.permute.xlu1 %502 }
 0x8e9   :  { %v505_v57 = vadd.f32 %v503_v56, %v495_v5 }
 0x8eb   :  { %1304 = vtanh.f32 %v505_v57 }
 0x8ec   :  { %1306 = vpow2.f32 %v1070_v59 }
 0x8f5   :  { %v1305_v58 = vpop.eup %1304 }
 0x8f6   :  { %508 = vrot.lane.b32.xlu0 %v1305_v58, %s1415_s1  ;;  %v1307_v60 = vpop.eup %1306 }
 0x8f7   :  { %v489_v61 = vadd.f32 1.0, %v1307_v60 }
 0x8f9   :  { %1308 = vrcp.f32 %v489_v61 }
 0x903   :  { %v1309_v62 = vpop.eup %1308 }
 0x968   :  { %v509_v63 = vpop.permute.xlu0 %508 }
 0x969   :  { %v511_v0 = vmul.f32 %v1309_v62, %v509_v63 }
 0x96b   :  { %1071 = vmatmul.mubr.msk.f32.vlgmr.msra.gmra.mrb[4].mxu0 %vm51_vm0, %v511_v0 }
 0x96c   :  { %1213 = vmatpush1.bf16.msra.mxu0 %v1478_v9  ;;  %800 = vmatprep.mubr.f32.mxu0 %v1414_v1 }
 0x96d   :  { %1215 = vmatprep.subr.bf16.mxu0 %v1480_v10 }
 0x970   :  { %1217 = vmatpush1.bf16.msra.mxu0 %v1485_v15 }
 0x971   :  { %1219 = vmatprep.subr.bf16.mxu0 %v1489_v16 }
 0x974   :  { %1221 = vmatpush1.bf16.msra.mxu0 %v1493_v21 }
 0x975   :  { %1223 = vmatprep.subr.bf16.mxu0 %v1497_v22 }
 0x978   :  { %1225 = vmatpush1.bf16.msra.mxu0 %v1501_v25 }
 0xa3e   :  { %v584_v3 = vpop.f32.mrb[4].mxu0 }
 0xa3f   :  { %v586_v4 = vpop.f32.mrb[5].mxu0  ;;  %v589_v11 = vadd.f32 %v584_v3, %v513_v8 }
 0xa40   :  { %v590_v6 = vadd.f32 %v586_v4, %v514_v2 }
 0xa41   :  { %v1072_v12 = vmul.f32 -1.442695, %v589_v11  ;;  %v841_v11 = vld [vmem:[#allocation5 + $0x78] sm:$0xff] }
 0xa42   :  { %1310 = vtanh.f32 %v590_v6  ;;  %v1073_v27 = vmul.f32 -1.442695, %v590_v6 }
 0xa43   :  { %1312 = vpow2.f32 %v1072_v12 }
 0xa4c   :  { %v1311_v7 = vpop.eup %1310 }
 0xa4d   :  { %606 = vrot.lane.b32.xlu1 %v1311_v7, %s1415_s1  ;;  %v1313_v13 = vpop.eup %1312 }
 0xa4e   :  { %v597_v14 = vadd.f32 1.0, %v1313_v13 }
 0xa50   :  { %1314 = vrcp.f32 %v597_v14 }
 0xa5a   :  { %v1315_v17 = vpop.eup %1314 }
 0xa5b   :  { %v604_v20 = vmul.f32 %v1315_v17, %v505_v57 }
 0xabf   :  { %v607_v18 = vpop.permute.xlu1 %606 }
 0xac0   :  { %v609_v19 = vmul.f32 %v1315_v17, %v607_v18  ;;  %v840_v18 = vld [vmem:[#allocation5 + $0x70] sm:$0xff] }
 0xac2   :  { %611 = vrot.lane.b32.xlu0 %v609_v19, %s1415_s1 }
 0xb34   :  { %v612_v23 = vpop.permute.xlu0 %611 }
 0xb35   :  { %v614_v24 = vadd.f32 %v612_v23, %v604_v20 }
 0xb37   :  { %1316 = vtanh.f32 %v614_v24 }
 0xb38   :  { %1318 = vpow2.f32 %v1073_v27 }
 0xb41   :  { %v1317_v26 = vpop.eup %1316 }
 0xb42   :  { %617 = vrot.lane.b32.xlu1 %v1317_v26, %s1415_s1  ;;  %v1319_v28 = vpop.eup %1318 }
 0xb43   :  { %v598_v29 = vadd.f32 1.0, %v1319_v28 }
 0xb45   :  { %1320 = vrcp.f32 %v598_v29  ;;  %v957_v29 = vld [vmem:[%s1629_s2] sm:$0xff] }
 0xb4f   :  { %v1321_v30 = vpop.eup %1320 }
 0xbb4   :  { %v618_v31 = vpop.permute.xlu1 %617 }
 0xbb5   :  { %v620_v32 = vmul.f32 %v1321_v30, %v618_v31  ;;  %v958_v30 = vld [vmem:[%s1629_s2 + $0x8] sm:$0xff]  ;;  %v1416_v31 = vmov 0.0|0.0  }
 0xbb6   :  { %1242 = vmatprep.subr.bf16.mxu0 %v1416_v31 }
 0xbb7   :  { %1074 = vmatmul.mubr.msk.f32.vlgmr.msra.gmra.mrb[4].mxu1 %vm51_vm0, %v620_v32  ;;  %v1243_v32 = vpack.c.bf16 %v958_v30, %v957_v29 }
 0xbb8   :  { %1229 = vmatpush1.bf16.msra.mxu1 %v1478_v9  ;;  %909 = vmatprep.mubr.f32.mxu1 %v1414_v1 }
 0xbb9   :  { %1231 = vmatprep.subr.bf16.mxu1 %v1480_v10 }
 0xbbc   :  { %1233 = vmatpush1.bf16.msra.mxu1 %v1485_v15 }
 0xbbd   :  { %1235 = vmatprep.subr.bf16.mxu1 %v1489_v16 }
 0xbc0   :  { %1237 = vmatpush1.bf16.msra.mxu1 %v1493_v21 }
 0xbc1   :  { %1239 = vmatprep.subr.bf16.mxu1 %v1497_v22 }
 0xbc4   :  { %1241 = vmatpush1.bf16.msra.mxu1 %v1501_v25 }
 0xc8a   :  { %v693_v34 = vpop.f32.mrb[4].mxu1 }
 0xc8b   :  { %v695_v35 = vpop.f32.mrb[5].mxu1  ;;  %v698_v10 = vadd.f32 %v693_v34, %v622_v37  ;;  %v960_v34 = vld [vmem:[%s1629_s2 + $0x18] sm:$0xff] }
 0xc8c   :  { %v699_v36 = vadd.f32 %v695_v35, %v623_v33  ;;  %v959_v33 = vld [vmem:[%s1629_s2 + $0x10] sm:$0xff] }
 0xc8d   :  { %v1075_v38 = vmul.f32 -1.442695, %v698_v10  ;;  %v1246_v35 = vpack.c.bf16 %v960_v34, %v959_v33  ;;  %v963_v10 = vld [vmem:[%s1629_s2 + $0x30] sm:$0xff] }
 0xc8e   :  { %1322 = vtanh.f32 %v699_v36  ;;  %v1076_v43 = vmul.f32 -1.442695, %v699_v36  ;;  %v961_v36 = vld [vmem:[%s1629_s2 + $0x20] sm:$0xff] }
 0xc8f   :  { %1324 = vpow2.f32 %v1075_v38  ;;  %v964_v38 = vld [vmem:[%s1629_s2 + $0x38] sm:$0xff] }
 0xc98   :  { %v1323_v9 = vpop.eup %1322 }
 0xc99   :  { %715 = vrot.lane.b32.xlu0 %v1323_v9, %s1415_s1  ;;  %v1325_v15 = vpop.eup %1324  ;;  %v962_v9 = vld [vmem:[%s1629_s2 + $0x28] sm:$0xff] }
 0xc9a   :  { %v706_v16 = vadd.f32 1.0, %v1325_v15  ;;  %v1249_v37 = vpack.c.bf16 %v962_v9, %v961_v36  ;;  %v1252_v15 = vpack.c.bf16 %v964_v38, %v963_v10 }
 0xc9c   :  { %1326 = vrcp.f32 %v706_v16 }
 0xca6   :  { %v1327_v21 = vpop.eup %1326 }
 0xca7   :  { %v713_v25 = vmul.f32 %v1327_v21, %v614_v24 }
 0xd0b   :  { %v716_v39 = vpop.permute.xlu0 %715 }
 0xd0c   :  { %v718_v22 = vmul.f32 %v1327_v21, %v716_v39 }
 0xd0e   :  { %720 = vrot.lane.b32.xlu1 %v718_v22, %s1415_s1 }
 0xd80   :  { %v721_v40 = vpop.permute.xlu1 %720 }
 0xd81   :  { %v723_v41 = vadd.f32 %v721_v40, %v713_v25 }
 0xd83   :  { %1328 = vtanh.f32 %v723_v41 }
 0xd84   :  { %1330 = vpow2.f32 %v1076_v43 }
 0xd8d   :  { %v1329_v42 = vpop.eup %1328 }
 0xd8e   :  { %726 = vrot.lane.b32.xlu0 %v1329_v42, %s1415_s1  ;;  %v1331_v44 = vpop.eup %1330 }
 0xd8f   :  { %v707_v45 = vadd.f32 1.0, %v1331_v44 }
 0xd91   :  { %1332 = vrcp.f32 %v707_v45 }
 0xd9b   :  { %v1333_v46 = vpop.eup %1332 }
 0xe00   :  { %v727_v47 = vpop.permute.xlu0 %726 }
 0xe01   :  { %v729_v48 = vmul.f32 %v1333_v46, %v727_v47 }
 0xe03   :  { %1077 = vmatmul.mubr.msk.f32.vlgmr.msra.gmra.mrb[6].mxu0 %vm51_vm0, %v729_v48 }
 0xe04   :  { %1244 = vmatpush3.bf16.msra.mxu0 %v1243_v32  ;;  %1111 = vmatprep.mubr.msk.f32.mxu0 %vm1417_vm1, %v1414_v1  ;;  %v1083_v1 = vld [vmem:[#allocation4] ss:$0 sm:$0xff] }
 0xe05   :  { %1245 = vmatprep.subr.bf16.mxu0 %v1416_v31 }
 0xe08   :  { %1247 = vmatpush3.bf16.msra.mxu0 %v1246_v35 }
 0xe09   :  { %1248 = vmatprep.subr.bf16.mxu0 %v1416_v31 }
 0xe0c   :  { %1250 = vmatpush3.bf16.msra.mxu0 %v1249_v37 }
 0xe0d   :  { %1251 = vmatprep.subr.bf16.mxu0 %v1416_v31 }
 0xe10   :  { %1253 = vmatpush3.bf16.msra.mxu0 %v1252_v15 }
 0xed6   :  { %v802_v50 = vpop.f32.mrb[6].mxu0 }
 0xed7   :  { %v804_v51 = vpop.f32.mrb[7].mxu0  ;;  %v807_v55 = vadd.f32 %v802_v50, %v731_v54 }
 0xed8   :  { %v808_v52 = vadd.f32 %v804_v51, %v732_v49 }
 0xed9   :  { %v1078_v5 = vmul.f32 -1.442695, %v807_v55 }
 0xeda   :  { %1334 = vtanh.f32 %v808_v52  ;;  %v1079_v2 = vmul.f32 -1.442695, %v808_v52 }
 0xedb   :  { %1336 = vpow2.f32 %v1078_v5 }
 0xee4   :  { %v1335_v53 = vpop.eup %1334 }
 0xee5   :  { %824 = vrot.lane.b32.xlu1 %v1335_v53, %s1415_s1  ;;  %v1337_v56 = vpop.eup %1336 }
 0xee6   :  { %v815_v57 = vadd.f32 1.0, %v1337_v56 }
 0xee8   :  { %1338 = vrcp.f32 %v815_v57 }
 0xef2   :  { %v1339_v58 = vpop.eup %1338 }
 0xef3   :  { %v822_v61 = vmul.f32 %v1339_v58, %v723_v41 }
 0xf57   :  { %v825_v59 = vpop.permute.xlu1 %824 }
 0xf58   :  { %v827_v60 = vmul.f32 %v1339_v58, %v825_v59 }
 0xf5a   :  { %829 = vrot.lane.b32.xlu0 %v827_v60, %s1415_s1 }
 0xfcc   :  { %v830_v62 = vpop.permute.xlu0 %829 }
 0xfcd   :  { %v832_v63 = vadd.f32 %v830_v62, %v822_v61 }
 0xfcf   :  { %1340 = vtanh.f32 %v832_v63 }
 0xfd0   :  { %1342 = vpow2.f32 %v1079_v2 }
 0xfd9   :  { %v1341_v0 = vpop.eup %1340 }
 0xfda   :  { %835 = vrot.lane.b32.xlu1 %v1341_v0, %s1415_s1  ;;  %v1343_v3 = vpop.eup %1342 }
 0xfdb   :  { %v816_v4 = vadd.f32 1.0, %v1343_v3 }
 0xfdd   :  { %1344 = vrcp.f32 %v816_v4 }
 0xfe7   :  { %v1345_v6 = vpop.eup %1344 }
0x104c   :  { %v836_v7 = vpop.permute.xlu1 %835 }
0x104d   :  { %v838_v8 = vmul.f32 %v1345_v6, %v836_v7 }
0x104f   :  { %1080 = vmatmul.mubr.msk.f32.vlgmr.msra.gmra.mrb[6].mxu1 %vm51_vm0, %v838_v8 }
0x1122   :  { %v911_v12 = vpop.f32.mrb[6].mxu1 }
0x1123   :  { %v913_v13 = vpop.f32.mrb[7].mxu1  ;;  %v916_v19 = vadd.f32 %v911_v12, %v840_v18 }
0x1124   :  { %v917_v14 = vadd.f32 %v913_v13, %v841_v11 }
0x1125   :  { %v1081_v20 = vmul.f32 -1.442695, %v916_v19 }
0x1126   :  { %1346 = vtanh.f32 %v917_v14  ;;  %v1082_v25 = vmul.f32 -1.442695, %v917_v14 }
0x1127   :  { %1348 = vpow2.f32 %v1081_v20 }
0x1130   :  { %v1347_v17 = vpop.eup %1346 }
0x1131   :  { %933 = vrot.lane.b32.xlu0 %v1347_v17, %s1415_s1  ;;  %v1349_v23 = vpop.eup %1348 }
0x1132   :  { %v924_v24 = vadd.f32 1.0, %v1349_v23 }
0x1134   :  { %1350 = vrcp.f32 %v924_v24 }
0x113e   :  { %v1351_v26 = vpop.eup %1350 }
0x113f   :  { %v931_v16 = vmul.f32 %v1351_v26, %v832_v63 }
0x11a3   :  { %v934_v27 = vpop.permute.xlu0 %933 }
0x11a4   :  { %v936_v28 = vmul.f32 %v1351_v26, %v934_v27 }
0x11a6   :  { %938 = vrot.lane.b32.xlu1 %v936_v28, %s1415_s1 }
0x1218   :  { %v939_v21 = vpop.permute.xlu1 %938 }
0x1219   :  { %v941_v39 = vadd.f32 %v939_v21, %v931_v16 }
0x121b   :  { %1352 = vtanh.f32 %v941_v39  ;;  %950 = vrot.lane.b32.xlu1 %v941_v39, %s1415_s1 }
0x121c   :  { %1354 = vpow2.f32 %v1082_v25 }
0x1225   :  { %v1353_v22 = vpop.eup %1352 }
0x1226   :  { %944 = vrot.lane.b32.xlu0 %v1353_v22, %s1415_s1  ;;  %v1355_v40 = vpop.eup %1354 }
0x1227   :  { %v925_v41 = vadd.f32 1.0, %v1355_v40 }
0x1229   :  { %1356 = vrcp.f32 %v925_v41 }
0x1233   :  { %v1357_v43 = vpop.eup %1356 }
0x128d   :  { %v951_v42 = vpop.permute.xlu1 %950 }
0x128e   :  { %953 = vst.msk [vmem:[#allocation3] sm:$0xff] %vm51_vm0, %v951_v42 }
0x1298   :  { %v945_v44 = vpop.permute.xlu0 %944 }
0x1299   :  { %v947_v45 = vmul.f32 %v1357_v43, %v945_v44 }
0x129b   :  { %948 = vst.msk [vmem:[#allocation2] sm:$0xff] %vm51_vm0, %v947_v45  ;;  %1112 = vmatmul.mubr.msk.f32.vlgmr.msra.gmra.mrb[8].mxu0 %vm51_vm0, %v947_v45 }
0x136e   :  { %v1041_v46 = vpop.f32.mrb[8].mxu0 }
0x136f   :  { %v1042_v47 = vadd.f32 %v1083_v1, %v1041_v46  ;;  %v1113_v48 = vpop.f32.mrb[9].mxu0 }
0x1371   :  { %v1085_v49 = vmul.f32 -1.442695, %v1042_v47 }
0x1373   :  { %1358 = vpow2.f32 %v1085_v49 }
0x137d   :  { %v1359_v50 = vpop.eup %1358 }
0x137e   :  { %v1048_v51 = vadd.f32 1.0, %v1359_v50 }
0x1380   :  { %1360 = vrcp.f32 %v1048_v51 }
0x138a   :  { %v1361_v52 = vpop.eup %1360 }
0x138b   :  { %1052 = vst.msk [vmem:[%s1631_s4] sm:$0xff] %vm1051_vm2, %v1361_v52 }
0x138c   :  { %1057 = vsyncpa [#allocation6], 1 }
0x138d   :  { %1058 = vsyncpa [#allocation8], 1 }

</bundles_post_ra>
